<compile_context>
chip_gen: v7x
topology: tpu7x:2x2x1
jax: 0.10.0
libtpu: 0.0.40
codegen_flags: <defaults>
</compile_context>

<pallas_src>
import jax
import jax.numpy as jnp
from jax.experimental import pallas as pl
from jax.experimental.pallas import tpu as pltpu


def _round_up(a, b):
    return (a + b - 1) // b * b


def _cdiv(a, b):
    return (a + b - 1) // b


def stochastic_kernel(sel_ref, tab_ref, out_ref):
    """Pure select+store: output row r = [y_{z[2r]} | y_{z[2r+1]}].

    sel_ref: (T, 2)   f32 in {0,1}: Bernoulli samples for the even/odd logical
                      rows packed into each 128-lane output row.
    tab_ref: (2, 128) f32: row k = [y_k | y_k], y_k = sigmoid(fc3(relu(fc2(k)))).
    out_ref: (T, 128) f32: lanes 0:64 = y[2r], lanes 64:128 = y[2r+1].
    """
    z = sel_ref[...]                                          # (T, 2)
    t = z.shape[0]
    lane = jax.lax.broadcasted_iota(jnp.int32, (t, 128), 1)
    zsel = jnp.where(lane < 64, z[:, 0:1], z[:, 1:2])         # (T, 128)
    row0 = tab_ref[0:1, :]                                    # (1, 128) = [y0 | y0]
    row1 = tab_ref[1:2, :]                                    # (1, 128) = [y1 | y1]
    out_ref[...] = jnp.where(zsel > 0.5, row1, row0)          # one select per vreg


def _fold_tables(params):
    """Collapse the whole network into 2-entry tables (done once, outside the kernel)."""
    w1, b1, w2, b2, w3, b3 = params                           # nn.Linear layouts
    w1m = w1.reshape(1, 2).astype(jnp.float32)
    b1s = b1.reshape(()).astype(jnp.float32)
    logits = w1m[0, :] + b1s                                  # (2,) logit for x = 0, 1
    p01 = jax.nn.sigmoid(logits)                              # (2,)
    ent01 = jax.nn.softplus(logits) - p01 * logits            # (2,) Bernoulli entropy

    w2m = w2.reshape(100, 1).astype(jnp.float32)
    b2m = b2.reshape(100).astype(jnp.float32)
    w3m = w3.reshape(64, 100).astype(jnp.float32)
    b3m = b3.reshape(64).astype(jnp.float32)
    h2_0 = jnp.maximum(b2m, 0.0)                              # relu(fc2(0))
    h2_1 = jnp.maximum(w2m[:, 0] + b2m, 0.0)                  # relu(fc2(1))
    y0 = jax.nn.sigmoid(h2_0 @ w3m.T + b3m)                   # (64,)
    y1 = jax.nn.sigmoid(h2_1 @ w3m.T + b3m)                   # (64,)
    ytab = jnp.stack([jnp.concatenate([y0, y0]),
                      jnp.concatenate([y1, y1])]).astype(jnp.float32)   # (2, 128)
    return p01, ent01, ytab


def stochastic_forward(x, params, key, *, tile_n=2048):
    """x: integer array with values in {0, 1}. Returns (y, p, entropy)."""
    orig_shape = x.shape
    n = int(x.size)

    p01, ent01, ytab = _fold_tables(params)

    # Per-row scalars are 2-entry gathers -> computed directly here.
    xf = x.reshape(-1).astype(jnp.int32)
    is1 = xf == 1                     # NOTE: any x outside {0,1} is treated as class 0.
    p = jnp.where(is1, p01[1], p01[0])
    ent = jnp.where(is1, ent01[1], ent01[0])

    # Bernoulli sample: forward value of z.detach() + p - p.detach() is exactly z.
    u = jax.random.uniform(key, (n,), dtype=jnp.float32)
    z = (u < p).astype(jnp.float32)                           # (n,) in {0, 1}

    # Pack two logical rows per 128-lane output row.  Balance the tile across
    # the grid so padding waste stays < 8 rows per tile (<1% for large n).
    n_pairs = max(_cdiv(n, 2), 1)
    num_tiles = max(_cdiv(n_pairs, int(tile_n)), 1)
    tile = _round_up(_cdiv(n_pairs, num_tiles), 8)
    n_pair_pad = num_tiles * tile

    sel = jnp.zeros((n_pair_pad * 2,), jnp.float32).at[:n].set(z)
    sel = sel.reshape(n_pair_pad, 2)

    out = pl.pallas_call(
        stochastic_kernel,
        out_shape=jax.ShapeDtypeStruct((n_pair_pad, 128), jnp.float32),
        grid=(num_tiles,),
        in_specs=[pl.BlockSpec((tile, 2), lambda i: (i, 0)),      # slim selector
                  pl.BlockSpec((2, 128), lambda i: (0, 0))],      # tiny folded table
        out_specs=pl.BlockSpec((tile, 128), lambda i: (i, 0)),    # lane-dense slab
        compiler_params=pltpu.CompilerParams(
            dimension_semantics=("parallel",)),
    )(sel, ytab)

    # (n_pair_pad, 128) -> (2*n_pair_pad, 64): row-major reshape restores the
    # packed even/odd rows to logical row order.
    y = out.reshape(n_pair_pad * 2, 64)[:n].reshape(orig_shape + (64,))
    p = p.reshape(orig_shape + (1,))
    ent = ent.reshape(orig_shape + (1,))
    return y, p, ent


def init_params(key):
    ks = jax.random.split(key, 6)
    # Shapes match nn.Linear(2,1), nn.Linear(1,100), nn.Linear(100,64).
    w1 = jax.random.normal(ks[0], (1, 2), jnp.float32) * 0.5
    b1 = jax.random.normal(ks[1], (1,), jnp.float32) * 0.1
    w2 = jax.random.normal(ks[2], (100, 1), jnp.float32) * 0.5
    b2 = jax.random.normal(ks[3], (100,), jnp.float32) * 0.1
    w3 = jax.random.normal(ks[4], (64, 100), jnp.float32) * 0.1
    b3 = jax.random.normal(ks[5], (64,), jnp.float32) * 0.1
    return (w1, b1, w2, b2, w3, b3)


if __name__ == "__main__":
    key = jax.random.PRNGKey(0)
    pkey, xkey, skey = jax.random.split(key, 3)
    params = init_params(pkey)

    # x: integer class ids in {0, 1}, batch=2, seq=8.
    x = jax.random.randint(xkey, (2, 8), 0, 2, dtype=jnp.int32)

    y, p, ent = stochastic_forward(x, params, skey)
    jax.block_until_ready((y, p, ent))

    assert y.shape == (2, 8, 64) and y.dtype == jnp.float32
    assert p.shape == (2, 8, 1) and p.dtype == jnp.float32
    assert ent.shape == (2, 8, 1) and ent.dtype == jnp.float32
    assert bool(jnp.all((p > 0.0) & (p < 1.0)))
    assert bool(jnp.all((y > 0.0) & (y < 1.0)))
    assert bool(jnp.all(ent >= 0.0))

    # Consistency check: every output row must equal one of the two folded table rows.
    _, _, ytab = _fold_tables(params)
    yf = y.reshape(-1, 64)
    d0 = jnp.abs(yf - ytab[0, :64]).max(axis=-1)
    d1 = jnp.abs(yf - ytab[1, :64]).max(axis=-1)
    assert bool(jnp.all(jnp.minimum(d0, d1) < 1e-6))

    print("KERNEL_OK")
</pallas_src>

<mosaic_0001>
module attributes {stable_mosaic.version = 11 : i64} {
  func.func @stochastic_kernel(%arg0: i32, %arg1: memref<8x2xf32, #tpu.memory_space<vmem>>, %arg2: memref<2x128xf32, #tpu.memory_space<vmem>>, %arg3: memref<8x128xf32, #tpu.memory_space<vmem>>) attributes {dimension_semantics = [#tpu.dimension_semantics<parallel>], iteration_bounds = array<i64: 1>, scalar_prefetch = 0 : i64, scratch_operands = 0 : i64, tpu.core_type = #tpu.core_type<tc>, window_params = [{transform_indices = @transform_0, window_bounds = array<i64: 8, 2>}, {pipeline_mode = #tpu.pipeline_mode<synchronous>, transform_indices = @transform_1, window_bounds = array<i64: 2, 128>}, {transform_indices = @transform_2, window_bounds = array<i64: 8, 128>}]} {
    %c0 = arith.constant 0 : index
    %c0_0 = arith.constant 0 : index
    %0 = vector.load %arg1[%c0, %c0_0] : memref<8x2xf32, #tpu.memory_space<vmem>>, vector<8x2xf32>
    %1 = tpu.iota {dimensions = array<i32: 1>} : vector<8x128xi32>
    %c64_i32 = arith.constant 64 : i32
    %2 = vector.broadcast %c64_i32 : i32 to vector<8x128xi32>
    %3 = arith.cmpi slt, %1, %2 : vector<8x128xi32>
    %4 = vector.extract_strided_slice %0 {offsets = [0, 0], sizes = [8, 1], strides = [1, 1]} : vector<8x2xf32> to vector<8x1xf32>
    %5 = vector.extract_strided_slice %0 {offsets = [0, 1], sizes = [8, 1], strides = [1, 1]} : vector<8x2xf32> to vector<8x1xf32>
    %6 = vector.shape_cast %4 : vector<8x1xf32> to vector<8x1xf32>
    %7 = vector.broadcast %6 : vector<8x1xf32> to vector<8x128xf32>
    %8 = vector.shape_cast %5 : vector<8x1xf32> to vector<8x1xf32>
    %9 = vector.broadcast %8 : vector<8x1xf32> to vector<8x128xf32>
    %10 = arith.select %3, %7, %9 : vector<8x128xi1>, vector<8x128xf32>
    %c0_1 = arith.constant 0 : index
    %c0_2 = arith.constant 0 : index
    %11 = vector.load %arg2[%c0_1, %c0_2] : memref<2x128xf32, #tpu.memory_space<vmem>>, vector<1x128xf32>
    %c1 = arith.constant 1 : index
    %c0_3 = arith.constant 0 : index
    %12 = vector.load %arg2[%c1, %c0_3] : memref<2x128xf32, #tpu.memory_space<vmem>>, vector<1x128xf32>
    %cst = arith.constant 5.000000e-01 : f32
    %13 = vector.broadcast %cst : f32 to vector<8x128xf32>
    %14 = arith.cmpf ogt, %10, %13 : vector<8x128xf32>
    %15 = vector.shape_cast %12 : vector<1x128xf32> to vector<1x128xf32>
    %16 = vector.broadcast %15 : vector<1x128xf32> to vector<8x128xf32>
    %17 = vector.shape_cast %11 : vector<1x128xf32> to vector<1x128xf32>
    %18 = vector.broadcast %17 : vector<1x128xf32> to vector<8x128xf32>
    %19 = arith.select %14, %16, %18 : vector<8x128xi1>, vector<8x128xf32>
    %c0_4 = arith.constant 0 : index
    %c0_5 = arith.constant 0 : index
    %20 = vector.load %arg3[%c0_4, %c0_5] : memref<8x128xf32, #tpu.memory_space<vmem>>, vector<8x128xf32>
    tpu.vector_store %arg3[%c0_4, %c0_5], %19 {strides = array<i32>} : memref<8x128xf32, #tpu.memory_space<vmem>>, vector<8x128xf32>,
    return
  }
  func.func @transform_0(%arg0: i32) -> (i32, i32) {
    %c0_i32 = arith.constant 0 : i32
    %c0_i32_0 = arith.constant 0 : i32
    return %arg0, %c0_i32 : i32, i32
  }
  func.func @transform_1(%arg0: i32) -> (i32, i32) {
    %c0_i32 = arith.constant 0 : i32
    %c0_i32_0 = arith.constant 0 : i32
    %c0_i32_1 = arith.constant 0 : i32
    return %c0_i32, %c0_i32_0 : i32, i32
  }
  func.func @transform_2(%arg0: i32) -> (i32, i32) {
    %c0_i32 = arith.constant 0 : i32
    %c0_i32_0 = arith.constant 0 : i32
    return %arg0, %c0_i32 : i32, i32
  }
}

</mosaic_0001>

<bundles_post_ra>
// kernel: tpu_custom_call.1
= control target key start
LH: loop header
LB: loop body
LE: loop exit
PB: predicated region body
PF: predicated region fallthrough
CT: control target
= control target key end

     0   :  { %s123_s0 = inlined_call_operand.vmem [shape: f32[8,2], index: 0, kind: input, shape index: {}]   ;;  %s124_s1 = inlined_call_operand.vmem [shape: f32[2,128], index: 1, kind: input, shape index: {}]   ;;  %s125_s2 = inlined_call_operand.hbm [shape: f32[8,128], index: 2, kind: output, shape index: {}]  }
   0x1   :  { %v12_v0 = vld [vmem:[%s123_s0] sm:$0xff] }
   0x2   :  { %7 = vsyncpa [#allocation3], 0  ;;  %v84_v1 = vmov 0   ;;  %v85_v2 = vmov 1   ;;  %v13_v3 = vlaneseq  ;;  %s86_s11 = smov [#allocation2]  }
   0x3   :  { %58 = vset.pattern.permute.xlu0 %v84_v1  ;;  %s45_s12 = sshll.u32 %s86_s11, 4  ;;  %v54_v7 = vld [vmem:[%s124_s1] ss:$0 sm:$0xff]  ;;  %v53_v8 = vld [vmem:[%s124_s1 + $0x1] ss:$0 sm:$0xff]  ;;  %s46_s12 = int_to_ptr.vmem [resolvable:$true] %s45_s12 }
   0x4   :  { %18 = vperm.xlu0 %58, %v12_v0   ;;  %v14_v4 = vand.u32 127, %v13_v3  ;;  %s60_s16 = scalar_lea.vmem %s46_s12, 128  ;;  %p65_p1 = scmp.lt.s32.totalorder %s46_s12, %s46_s12 }
   0x5   :  { %p61_p0 = scmp.ne.s32.totalorder %s46_s12, %s60_s16  ;;  %p66_p2 = scmp.lt.s32.totalorder %s60_s16, %s60_s16 }
   0x6   :  { %vm15_vm0 = vcmp.lt.s32.totalorder %v14_v4, 64 }
   0x7   :  { %p67_p3 = por %p66_p2, %p65_p1 }
   0x8   :  { %59 = vset.pattern.permute.xlu0 %v85_v2 }
   0x9   :  { %22 = vperm.xlu0 %59, %v12_v0   ;;  %p68_p4 = pnand %p67_p3, %p61_p0 }
  0x83   :  { %v19_v5 = vpop.permute.xlu0 %18 }
  0x88   :  { %v23_v6 = vpop.permute.xlu0 %22 }
  0x89   :  { %v25_v9 = vsel %vm15_vm0, %v19_v5, %v23_v6 }
  0x8a   :  { %vm28_vm1 = vcmp.gt.f32.partialorder %v25_v9, 0.5 }
  0x8b   :  { %v37_v10 = vsel %vm28_vm1, %v53_v8, %v54_v7 }
  0x8c   :  { %38 = vst [vmem:[#allocation2] sm:$0xff] %v37_v10 }
  0x8d   :  { %71 = shalt.err (!%p68_p4)
}
  0x8e   :  { %s72_s19 = scalar_lea.hbm %s125_s2, 128 }
  0x8f   :  { %p73_p5 = scmp.ne.s32.totalorder %s125_s2, %s72_s19  ;;  %p76_p6 = scmp.lt.u32.totalorder %s72_s19, %s125_s2 }
  0x91   :  { %p78_p7 = pnand %p76_p6, %p73_p5 }
  0x93   :  { %81 = shalt.err (!%p78_p7)
}
  0x94   :  { %48 = dma.vmem_to_hbm [thread:$0]  %s46_s12, 128, %s125_s2, [#allocation3]  }
  0x95   :  { %82 = dma.done.wait [#allocation3], 128  }
  0x96   :  { %83 = vsyncadd [#allocation3], 4294967168 }
  0x97   :  { %52 = vsyncpa [#allocation3], 1 }

</bundles_post_ra>
